<compile_context>
chip_gen: v7x
topology: tpu7x:2x2x1
jax: 0.10.0
libtpu: 0.0.40
codegen_flags: <defaults>
</compile_context>

<pallas_src>
import jax
import jax.numpy as jnp
from jax.experimental import pallas as pl
from jax.experimental.pallas import tpu as pltpu


def _round_up(x, m):
    return (x + m - 1) // m * m


def peak_embedding_kernel(mz_ref, inten_ref, freq_ref, phase_ref,
                          w1_ref, w1i_ref, b1_ref, w2_ref, b2_ref, out_ref):
    # mz_ref:    [TM, 1] f32   m/z values of this row tile
    # inten_ref: [TM, 1] f32   intensities
    # freq_ref:  [1, D]  f32   inverse wavelengths, duplicated for sin/cos halves
    # phase_ref: [1, D]  f32   0 on the sin half, pi/2 on the cos half
    # w1_ref:    [D, H]  bf16  linear_1 rows acting on the sinusoidal embedding
    # w1i_ref:   [1, H]  f32   linear_1 row acting on the intensity column
    # b1_ref:    [1, H]  f32
    # w2_ref:    [H, D]  bf16  linear_2 weight
    # b2_ref:    [1, D]  f32
    # out_ref:   [TM, D]
    mz = mz_ref[...]            # [TM, 1]
    inten = inten_ref[...]      # [TM, 1]

    # Merged sinusoidal embedding: [sin(a) | cos(a)] == sin(freq_full*mz + phase).
    # Angles may reach ~2000 rad so the transcendental stage stays f32; only MXU
    # operands are cast to bf16. The f32-rounded pi/2 phase adds <~1e-4 abs error,
    # well inside the bf16 tolerance.
    angles = mz * freq_ref[...] + phase_ref[...]          # [TM, D] f32
    embd = jnp.sin(angles)                                # [TM, D] f32 (EUP)
    # TODO(synk): if profiling shows the VPU range-reduction is the saturated
    # slot, replace with a hand-fused sincos that shares one range reduction.

    # linear_1 on [embd | intensity]: one full-K (K=D) matmul + rank-1 intensity
    # term + bias (VPU).
    h = (jnp.dot(embd.astype(w1_ref.dtype), w1_ref[...],
                 preferred_element_type=jnp.float32)
         + inten * w1i_ref[...]
         + b1_ref[...])                                   # [TM, H] f32
    h = jnp.maximum(h, 0.0)                               # ReLU (dropout p=0 -> id)

    # linear_2
    y = jnp.dot(h.astype(w2_ref.dtype), w2_ref[...],
                preferred_element_type=jnp.float32) + b2_ref[...]   # [TM, D] f32
    out_ref[...] = y.astype(out_ref.dtype)


def peak_embedding(mz, intensity, params, *, tile_m=1024, drop_precursor=False,
                   out_dtype=jnp.float32, vmem_limit_bytes=48 * 1024 * 1024):
    """mz: [B, S] f32, intensity: [B, S, 1] f32 -> [B, S, D] out_dtype."""
    if drop_precursor:
        mz = mz[:, 1:]
        intensity = intensity[:, 1:, :]

    B, S = mz.shape
    D, H = params["w1e"].shape
    M = B * S

    # Tile the flattened peak axis; shrink the tile for small inputs so at most
    # a few padded rows are ever computed.
    tm = min(_round_up(tile_m, 8), _round_up(M, 8))
    n_tiles = pl.cdiv(M, tm)
    Mp = n_tiles * tm

    mz_col = jnp.pad(mz.reshape(M).astype(jnp.float32), (0, Mp - M)).reshape(Mp, 1)
    in_col = jnp.pad(intensity.reshape(M).astype(jnp.float32), (0, Mp - M)).reshape(Mp, 1)

    const = lambda i: (0, 0)   # weights: single block, stays VMEM-resident
    weight_bytes = (2 * D * 4                      # freq_row + phase_row
                    + D * H * 2 + H * 4 + H * 4    # w1e (bf16) + w1i + b1
                    + H * D * 2 + D * 4)           # w2 (bf16) + b2
    out_bytes = jnp.dtype(out_dtype).itemsize
    cost = pl.CostEstimate(
        flops=int(4 * Mp * D * H),
        transcendentals=int(Mp * D),
        bytes_accessed=int(Mp * 8 + Mp * D * out_bytes + weight_bytes),
    )

    out_flat = pl.pallas_call(
        peak_embedding_kernel,
        out_shape=jax.ShapeDtypeStruct((Mp, D), out_dtype),
        grid_spec=pltpu.PrefetchScalarGridSpec(
            num_scalar_prefetch=0,
            grid=(n_tiles,),
            in_specs=[
                pl.BlockSpec((tm, 1), lambda i: (i, 0)),   # mz
                pl.BlockSpec((tm, 1), lambda i: (i, 0)),   # intensity
                pl.BlockSpec((1, D), const),               # freq_full row
                pl.BlockSpec((1, D), const),               # phase row
                pl.BlockSpec((D, H), const),               # w1 embedding rows
                pl.BlockSpec((1, H), const),               # w1 intensity row
                pl.BlockSpec((1, H), const),               # b1
                pl.BlockSpec((H, D), const),               # w2
                pl.BlockSpec((1, D), const),               # b2
            ],
            out_specs=pl.BlockSpec((tm, D), lambda i: (i, 0)),
        ),
        compiler_params=pltpu.CompilerParams(
            dimension_semantics=("parallel",),     # megacore sharding on v7x
            vmem_limit_bytes=vmem_limit_bytes,
        ),
        cost_estimate=cost,
    )(mz_col, in_col, params["freq_row"], params["phase_row"], params["w1e"],
      params["w1i_row"], params["b1_row"], params["w2b"], params["b2_row"])

    # Padded tail rows (if any) are dropped with a cheap contiguous slice;
    # no relayout / transpose is needed anymore.
    return out_flat[:M].reshape(B, S, D)


def make_params(key, embd_dim, hidden_dim=None, max_wavelength=10000.0):
    """Deterministic synthetic parameters mirroring the module's __init__ shapes."""
    hidden_dim = embd_dim if hidden_dim is None else hidden_dim
    in_dim = embd_dim + 1              # sinusoidal embd concat intensity
    half = embd_dim // 2

    # Transformer-style sinusoidal inverse frequencies.
    exponents = jnp.arange(half, dtype=jnp.float32) / jnp.maximum(half - 1, 1)
    inv_freq = 1.0 / (max_wavelength ** exponents)              # [D/2]

    k1, k2, k3, k4 = jax.random.split(key, 4)
    bound1 = 1.0 / jnp.sqrt(jnp.float32(in_dim))
    bound2 = 1.0 / jnp.sqrt(jnp.float32(hidden_dim))
    # nn.Linear stores weight as [out, in]; keep the [in, out] transpose for x @ W.
    w1 = jax.random.uniform(k1, (in_dim, hidden_dim), jnp.float32, -bound1, bound1)
    b1 = jax.random.uniform(k2, (hidden_dim,), jnp.float32, -bound1, bound1)
    w2 = jax.random.uniform(k3, (hidden_dim, embd_dim), jnp.float32, -bound2, bound2)
    b2 = jax.random.uniform(k4, (embd_dim,), jnp.float32, -bound2, bound2)

    # Merged sin/cos frequencies and phase offsets (cos(x) = sin(x + pi/2)).
    freq_full = jnp.concatenate([inv_freq, inv_freq])                       # [D]
    phase = jnp.concatenate([jnp.zeros((half,), jnp.float32),
                             jnp.full((half,), jnp.pi / 2, jnp.float32)])   # [D]

    return {
        # f32 master copies (for the reference)
        "freq": inv_freq, "w1": w1, "b1": b1, "w2": w2, "b2": b2,
        # kernel-side parameters: MXU operands pre-cast to bf16
        "freq_row": freq_full.reshape(1, embd_dim),
        "phase_row": phase.reshape(1, embd_dim),
        "w1e": w1[:embd_dim, :].astype(jnp.bfloat16),            # [D, H] embd rows
        "w1i_row": w1[embd_dim, :].reshape(1, hidden_dim),       # [1, H] intensity row
        "b1_row": b1.reshape(1, hidden_dim),                     # [1, H]
        "w2b": w2.astype(jnp.bfloat16),                          # [H, D]
        "b2_row": b2.reshape(1, embd_dim),                       # [1, D]
    }


def reference(mz, intensity, params):
    """Pure-JAX f32 reference of PeakEmbedding.forward (dropout=0, drop_precursor=False)."""
    angles = mz[..., None] * params["freq"]                         # [B, S, D/2]
    embd = jnp.concatenate([jnp.sin(angles), jnp.cos(angles)], -1)  # [B, S, D]
    x = jnp.concatenate([embd, intensity], axis=2)                  # [B, S, D+1]
    h = jnp.maximum(x @ params["w1"] + params["b1"], 0.0)
    return h @ params["w2"] + params["b2"]


if __name__ == "__main__":
    B, S, D = 2, 8, 32  # batch, peaks-per-spectrum, embd_dim (hidden_dim = D)
    key = jax.random.PRNGKey(0)
    kp, km, ki = jax.random.split(key, 3)

    params = make_params(kp, D)
    mz = jax.random.uniform(km, (B, S), jnp.float32, 0.0, 2000.0)        # m/z values
    intensity = jax.random.uniform(ki, (B, S, 1), jnp.float32, 0.0, 1.0)

    out = peak_embedding(mz, intensity, params)
    out = jax.block_until_ready(out)

    ref = reference(mz, intensity, params)
    assert out.shape == (B, S, D)
    # bf16 MXU operands (f32 accumulation) -> loosened tolerance vs the f32 reference.
    assert jnp.allclose(out, ref, atol=5e-2, rtol=5e-2), "mismatch vs f32 reference"
    print("KERNEL_OK")
</pallas_src>

<mosaic_0001>
module attributes {stable_mosaic.version = 11 : i64} {
  func.func @peak_embedding_kernel(%arg0: i32, %arg1: memref<16x1xf32, #tpu.memory_space<vmem>>, %arg2: memref<16x1xf32, #tpu.memory_space<vmem>>, %arg3: memref<1x32xf32, #tpu.memory_space<vmem>>, %arg4: memref<1x32xf32, #tpu.memory_space<vmem>>, %arg5: memref<32x32xbf16, #tpu.memory_space<vmem>>, %arg6: memref<1x32xf32, #tpu.memory_space<vmem>>, %arg7: memref<1x32xf32, #tpu.memory_space<vmem>>, %arg8: memref<32x32xbf16, #tpu.memory_space<vmem>>, %arg9: memref<1x32xf32, #tpu.memory_space<vmem>>, %arg10: memref<16x32xf32, #tpu.memory_space<vmem>>) attributes {dimension_semantics = [#tpu.dimension_semantics<parallel>], iteration_bounds = array<i64: 1>, scalar_prefetch = 0 : i64, scratch_operands = 0 : i64, tpu.core_type = #tpu.core_type<tc>, window_params = [{transform_indices = @transform_0, window_bounds = array<i64: 16, 1>}, {transform_indices = @transform_1, window_bounds = array<i64: 16, 1>}, {pipeline_mode = #tpu.pipeline_mode<synchronous>, transform_indices = @transform_2, window_bounds = array<i64: 1, 32>}, {pipeline_mode = #tpu.pipeline_mode<synchronous>, transform_indices = @transform_3, window_bounds = array<i64: 1, 32>}, {pipeline_mode = #tpu.pipeline_mode<synchronous>, transform_indices = @transform_4, window_bounds = array<i64: 32, 32>}, {pipeline_mode = #tpu.pipeline_mode<synchronous>, transform_indices = @transform_5, window_bounds = array<i64: 1, 32>}, {pipeline_mode = #tpu.pipeline_mode<synchronous>, transform_indices = @transform_6, window_bounds = array<i64: 1, 32>}, {pipeline_mode = #tpu.pipeline_mode<synchronous>, transform_indices = @transform_7, window_bounds = array<i64: 32, 32>}, {pipeline_mode = #tpu.pipeline_mode<synchronous>, transform_indices = @transform_8, window_bounds = array<i64: 1, 32>}, {transform_indices = @transform_9, window_bounds = array<i64: 16, 32>}]} {
    %c0 = arith.constant 0 : index
    %c0_0 = arith.constant 0 : index
    %0 = vector.load %arg1[%c0, %c0_0] : memref<16x1xf32, #tpu.memory_space<vmem>>, vector<16x1xf32>
    %c0_1 = arith.constant 0 : index
    %c0_2 = arith.constant 0 : index
    %1 = vector.load %arg2[%c0_1, %c0_2] : memref<16x1xf32, #tpu.memory_space<vmem>>, vector<16x1xf32>
    %c0_3 = arith.constant 0 : index
    %c0_4 = arith.constant 0 : index
    %2 = vector.load %arg3[%c0_3, %c0_4] : memref<1x32xf32, #tpu.memory_space<vmem>>, vector<1x32xf32>
    %3 = vector.broadcast %0 : vector<16x1xf32> to vector<16x32xf32>
    %4 = vector.broadcast %2 : vector<1x32xf32> to vector<16x32xf32>
    %5 = arith.mulf %3, %4 : vector<16x32xf32>
    %c0_5 = arith.constant 0 : index
    %c0_6 = arith.constant 0 : index
    %6 = vector.load %arg4[%c0_5, %c0_6] : memref<1x32xf32, #tpu.memory_space<vmem>>, vector<1x32xf32>
    %7 = vector.broadcast %6 : vector<1x32xf32> to vector<16x32xf32>
    %8 = arith.addf %5, %7 : vector<16x32xf32>
    %9 = math.sin %8 : vector<16x32xf32>
    %10 = arith.truncf %9 : vector<16x32xf32> to vector<16x32xbf16>
    %c0_7 = arith.constant 0 : index
    %c0_8 = arith.constant 0 : index
    %11 = vector.load %arg5[%c0_7, %c0_8] : memref<32x32xbf16, #tpu.memory_space<vmem>>, vector<32x32xbf16>
    %cst = arith.constant dense<0.000000e+00> : vector<16x32xf32>
    %12 = tpu.matmul %10, %11, %cst {dimension_numbers = #tpu.dot_dimension_numbers<[1], [0], [0], [1], [0, 0, 1, 1], [], []>} : vector<16x32xbf16>, vector<32x32xbf16>, vector<16x32xf32> -> vector<16x32xf32>
    %c0_9 = arith.constant 0 : index
    %c0_10 = arith.constant 0 : index
    %13 = vector.load %arg6[%c0_9, %c0_10] : memref<1x32xf32, #tpu.memory_space<vmem>>, vector<1x32xf32>
    %14 = vector.broadcast %1 : vector<16x1xf32> to vector<16x32xf32>
    %15 = vector.broadcast %13 : vector<1x32xf32> to vector<16x32xf32>
    %16 = arith.mulf %14, %15 : vector<16x32xf32>
    %17 = arith.addf %12, %16 : vector<16x32xf32>
    %c0_11 = arith.constant 0 : index
    %c0_12 = arith.constant 0 : index
    %18 = vector.load %arg7[%c0_11, %c0_12] : memref<1x32xf32, #tpu.memory_space<vmem>>, vector<1x32xf32>
    %19 = vector.broadcast %18 : vector<1x32xf32> to vector<16x32xf32>
    %20 = arith.addf %17, %19 : vector<16x32xf32>
    %cst_13 = arith.constant 0.000000e+00 : f32
    %21 = vector.broadcast %cst_13 : f32 to vector<16x32xf32>
    %22 = arith.maximumf %20, %21 : vector<16x32xf32>
    %23 = arith.truncf %22 : vector<16x32xf32> to vector<16x32xbf16>
    %c0_14 = arith.constant 0 : index
    %c0_15 = arith.constant 0 : index
    %24 = vector.load %arg8[%c0_14, %c0_15] : memref<32x32xbf16, #tpu.memory_space<vmem>>, vector<32x32xbf16>
    %cst_16 = arith.constant dense<0.000000e+00> : vector<16x32xf32>
    %25 = tpu.matmul %23, %24, %cst_16 {dimension_numbers = #tpu.dot_dimension_numbers<[1], [0], [0], [1], [0, 0, 1, 1], [], []>} : vector<16x32xbf16>, vector<32x32xbf16>, vector<16x32xf32> -> vector<16x32xf32>
    %c0_17 = arith.constant 0 : index
    %c0_18 = arith.constant 0 : index
    %26 = vector.load %arg9[%c0_17, %c0_18] : memref<1x32xf32, #tpu.memory_space<vmem>>, vector<1x32xf32>
    %27 = vector.broadcast %26 : vector<1x32xf32> to vector<16x32xf32>
    %28 = arith.addf %25, %27 : vector<16x32xf32>
    %c0_19 = arith.constant 0 : index
    %c0_20 = arith.constant 0 : index
    %29 = vector.load %arg10[%c0_19, %c0_20] : memref<16x32xf32, #tpu.memory_space<vmem>>, vector<16x32xf32>
    tpu.vector_store %arg10[%c0_19, %c0_20], %28 {strides = array<i32>} : memref<16x32xf32, #tpu.memory_space<vmem>>, vector<16x32xf32>,
    return
  }
  func.func @transform_0(%arg0: i32) -> (i32, i32) {
    %c0_i32 = arith.constant 0 : i32
    %c0_i32_0 = arith.constant 0 : i32
    return %arg0, %c0_i32 : i32, i32
  }
  func.func @transform_1(%arg0: i32) -> (i32, i32) {
    %c0_i32 = arith.constant 0 : i32
    %c0_i32_0 = arith.constant 0 : i32
    return %arg0, %c0_i32 : i32, i32
  }
  func.func @transform_2(%arg0: i32) -> (i32, i32) {
    %c0_i32 = arith.constant 0 : i32
    %c0_i32_0 = arith.constant 0 : i32
    %c0_i32_1 = arith.constant 0 : i32
    return %c0_i32, %c0_i32_0 : i32, i32
  }
  func.func @transform_3(%arg0: i32) -> (i32, i32) {
    %c0_i32 = arith.constant 0 : i32
    %c0_i32_0 = arith.constant 0 : i32
    %c0_i32_1 = arith.constant 0 : i32
    return %c0_i32, %c0_i32_0 : i32, i32
  }
  func.func @transform_4(%arg0: i32) -> (i32, i32) {
    %c0_i32 = arith.constant 0 : i32
    %c0_i32_0 = arith.constant 0 : i32
    %c0_i32_1 = arith.constant 0 : i32
    return %c0_i32, %c0_i32_0 : i32, i32
  }
  func.func @transform_5(%arg0: i32) -> (i32, i32) {
    %c0_i32 = arith.constant 0 : i32
    %c0_i32_0 = arith.constant 0 : i32
    %c0_i32_1 = arith.constant 0 : i32
    return %c0_i32, %c0_i32_0 : i32, i32
  }
  func.func @transform_6(%arg0: i32) -> (i32, i32) {
    %c0_i32 = arith.constant 0 : i32
    %c0_i32_0 = arith.constant 0 : i32
    %c0_i32_1 = arith.constant 0 : i32
    return %c0_i32, %c0_i32_0 : i32, i32
  }
  func.func @transform_7(%arg0: i32) -> (i32, i32) {
    %c0_i32 = arith.constant 0 : i32
    %c0_i32_0 = arith.constant 0 : i32
    %c0_i32_1 = arith.constant 0 : i32
    return %c0_i32, %c0_i32_0 : i32, i32
  }
  func.func @transform_8(%arg0: i32) -> (i32, i32) {
    %c0_i32 = arith.constant 0 : i32
    %c0_i32_0 = arith.constant 0 : i32
    %c0_i32_1 = arith.constant 0 : i32
    return %c0_i32, %c0_i32_0 : i32, i32
  }
  func.func @transform_9(%arg0: i32) -> (i32, i32) {
    %c0_i32 = arith.constant 0 : i32
    %c0_i32_0 = arith.constant 0 : i32
    return %arg0, %c0_i32 : i32, i32
  }
}

</mosaic_0001>

<bundles_post_ra>
// kernel: tpu_custom_call.1
= control target key start
LH: loop header
LB: loop body
LE: loop exit
PB: predicated region body
PF: predicated region fallthrough
CT: control target
= control target key end

     0   :  { %v551_v1 = vmov 0   ;;  %s751_s0 = inlined_call_operand.vmem [shape: f32[16,1], index: 0, kind: input, shape index: {}]   ;;  %s752_s1 = inlined_call_operand.vmem [shape: f32[16,1], index: 1, kind: input, shape index: {}]   ;;  %s753_s2 = inlined_call_operand.vmem [shape: f32[1,32], index: 2, kind: input, shape index: {}]   ;;  %s754_s3 = inlined_call_operand.vmem [shape: f32[1,32], index: 3, kind: input, shape index: {}]   ;;  %s755_s4 = inlined_call_operand.vmem [shape: bf16[32,32], index: 4, kind: input, shape index: {}]   ;;  %s756_s5 = inlined_call_operand.vmem [shape: f32[1,32], index: 5, kind: input, shape index: {}]   ;;  %s757_s6 = inlined_call_operand.vmem [shape: f32[1,32], index: 6, kind: input, shape index: {}]   ;;  %s758_s7 = inlined_call_operand.vmem [shape: bf16[32,32], index: 7, kind: input, shape index: {}]   ;;  %s759_s8 = inlined_call_operand.vmem [shape: f32[1,32], index: 8, kind: input, shape index: {}]   ;;  %s760_s9 = inlined_call_operand.hbm [shape: f32[16,32], index: 9, kind: output, shape index: {}]  }
   0x1   :  { %v34_v0 = vld [vmem:[%s751_s0] sm:$0xff]  ;;  %513 = vset.pattern.permute.xlu0 %v551_v1  ;;  %514 = vset.pattern.permute.xlu1 %v551_v1  ;;  %v35_v2 = vld [vmem:[%s751_s0 + $0x8] sm:$0xff] }
   0x2   :  { %41 = vperm.xlu0 %513, %v34_v0  }
   0x6   :  { %46 = vperm.xlu0 %513, %v35_v2  }
   0x7   :  { %14 = vsyncpa [#allocation3], 0  ;;  %v515_v3 = vld [vmem:[%s755_s4] sm:$0xff]   ;;  %v552_v4 = vmov 0.0   ;;  %vm553_vm0 = vmmov 0   ;;  %v516_v5 = vld [vmem:[%s755_s4 + $0x8] sm:$0xff]  }
   0x8   :  { %477 = vmatprep.subr.bf16.mxu0 %v552_v4  ;;  %481 = vmatprep.mubr.msk.bf16.mxu0 %vm553_vm0, %v552_v4  ;;  %v36_v6 = vld [vmem:[%s752_s1] sm:$0xff]  ;;  %v37_v7 = vld [vmem:[%s752_s1 + $0x8] sm:$0xff]  ;;  %v554_v32 = vmov 683565275   ;;  %v555_v36 = vmov 2475754826  }
   0x9   :  { %478 = vmatpush3.bf16.msra.mxu0 %v515_v3  ;;  %485 = vmatprep.subr.bf16.mxu1 %v552_v4  ;;  %v452_v8 = vld [vmem:[%s753_s2] ss:$0 sm:$0xff]  ;;  %v556_v38 = vmov 2131351028   ;;  %v557_v40 = vmov 2102212464  }
   0xa   :  { %479 = vmatprep.subr.bf16.mxu0 %v552_v4  ;;  %489 = vmatprep.mubr.msk.bf16.mxu1 %vm553_vm0, %v552_v4  ;;  %v453_v9 = vld [vmem:[%s754_s3] ss:$0 sm:$0xff]  ;;  %v558_v42 = vmov 920167782   ;;  %v559_v49 = vmov 1326507024  }
   0xb   :  { %282 = vperm.xlu1 %514, %v36_v6   ;;  %s560_s28 = smov [#allocation2]  }
   0xd   :  { %480 = vmatpush3.bf16.msra.mxu0 %v516_v5 }
   0xf   :  { %287 = vperm.xlu1 %514, %v37_v7  }
  0x81   :  { %v42_v10 = vpop.permute.xlu0 %41 }
  0x82   :  { %v55_v11 = vmul.f32 %v452_v8, %v42_v10 }
  0x84   :  { %v642_v12 = vadd.f32 %v453_v9, %v55_v11 }
  0x85   :  { %v47_v13 = vpop.permute.xlu0 %46 }
  0x86   :  { %v66_v14 = vand.u32 2147483647, %v642_v12  ;;  %v69_v15 = vand.u32 2139095040, %v642_v12  ;;  %v56_v16 = vmul.f32 %v452_v8, %v47_v13  ;;  %vm68_vm15 = vcmp.lt.s32.totalorder %v642_v12, 0 }
  0x88   :  { %v70_v17 = vshrl.u32 %v69_v15, 23  ;;  %v646_v18 = vadd.f32 %v453_v9, %v56_v16  ;;  %v73_v19 = vand.u32 8388607, %v66_v14  ;;  %vm700_vm0 = vcmp.le.f32.partialorder %v66_v14, 0.7853982 }
  0x8a   :  { %v454_v20 = vadd.s32 4294967169, %v70_v17  ;;  %v173_v21 = vand.u32 2139095040, %v646_v18  ;;  %v74_v23 = vor.u32 8388608, %v73_v19  ;;  %v170_v25 = vand.u32 2147483647, %v646_v18 }
  0x8c   :  { %v76_v22 = vadd.s32 1, %v454_v20  ;;  %v174_v24 = vshrl.u32 %v173_v21, 23  ;;  %v652_v30 = vshll.u32 %v74_v23, 8  ;;  %v177_v34 = vand.u32 8388607, %v170_v25 }
  0x8e   :  { %vm77_vm1 = vcmp.gt.s32.totalorder %v76_v22, 0  ;;  %v458_v27 = vadd.s32 4294967169, %v174_v24  ;;  %v178_v0 = vor.u32 8388608, %v177_v34 }
  0x8f   :  { %v78_v26 = vsel %vm77_vm1, %v76_v22, 0  ;;  %vm172_vm1 = vcmp.lt.s32.totalorder %v646_v18, 0 }
  0x90   :  { %v79_v28 = vshrl.u32 %v78_v26, 5  ;;  %v80_v29 = vand.u32 31, %v78_v26  ;;  %v180_v35 = vadd.s32 1, %v458_v27  ;;  %v218_v16 = vshll.u32 %v178_v0, 8 }
  0x92   :  { %v81_v31 = vsub.s32 32, %v80_v29  ;;  %v83_v33 = vshll.u32 %v554_v32, %v80_v29  ;;  %v86_v37 = vshll.u32 %v555_v36, %v80_v29  ;;  %v89_v39 = vshll.u32 %v556_v38, %v80_v29 }
  0x93   :  { %v92_v41 = vshll.u32 %v557_v40, %v80_v29  ;;  %v95_v43 = vshll.u32 %v558_v42, %v80_v29  ;;  %vm98_vm2 = vcmp.lt.s32.totalorder %v79_v28, 1  ;;  %vm100_vm3 = vcmp.lt.s32.totalorder %v79_v28, 3 }
  0x94   :  { %v84_v44 = vshrl.u32 %v555_v36, %v81_v31  ;;  %v87_v45 = vshrl.u32 %v556_v38, %v81_v31  ;;  %v90_v46 = vshrl.u32 %v557_v40, %v81_v31  ;;  %v82_v47 = vshrl.u32 %v554_v32, %v81_v31 }
  0x95   :  { %v93_v48 = vshrl.u32 %v558_v42, %v81_v31  ;;  %v96_v50 = vshrl.u32 %v559_v49, %v81_v31  ;;  %vm181_vm4 = vcmp.gt.s32.totalorder %v180_v35, 0  ;;  %vm101_vm5 = vcmp.lt.s32.totalorder %v79_v28, 4 }
  0x96   :  { %v85_v51 = vor.u32 %v84_v44, %v83_v33  ;;  %v88_v52 = vor.u32 %v87_v45, %v86_v37  ;;  %v91_v53 = vor.u32 %v90_v46, %v89_v39  ;;  %v182_v56 = vsel %vm181_vm4, %v180_v35, 0 }
  0x97   :  { %v94_v54 = vor.u32 %v93_v48, %v92_v41  ;;  %v97_v55 = vor.u32 %v96_v50, %v95_v43  ;;  %vm99_vm6 = vcmp.lt.s32.totalorder %v79_v28, 2  ;;  %v184_v3 = vand.u32 31, %v182_v56 }
  0x98   :  { %v102_v57 = vsel %vm98_vm2, %v82_v47, %v85_v51  ;;  %v103_v58 = vsel %vm101_vm5, %v91_v53, 2102212464  ;;  %v106_v59 = vsel %vm98_vm2, %v85_v51, %v88_v52  ;;  %v110_v60 = vsel %vm98_vm2, %v88_v52, %v91_v53 }
  0x99   :  { %v104_v61 = vsel %vm100_vm3, %v88_v52, %v103_v58  ;;  %v107_v62 = vsel %vm101_vm5, %v94_v54, 920167782  ;;  %v111_v63 = vsel %vm101_vm5, %v97_v55, 1326507024  ;;  %v183_v13 = vshrl.u32 %v182_v56, 5 }
  0x9a   :  { %v108_v1 = vsel %vm100_vm3, %v91_v53, %v107_v62  ;;  %v112_v2 = vsel %vm100_vm3, %v94_v54, %v111_v63  ;;  %v105_v5 = vsel %vm99_vm6, %v102_v57, %v104_v61  ;;  %v185_v15 = vsub.s32 32, %v184_v3 }
  0x9b   :  { %v109_v6 = vsel %vm99_vm6, %v106_v59, %v108_v1  ;;  %v113_v7 = vsel %vm99_vm6, %v110_v60, %v112_v2  ;;  %v121_v17 = vmul.u32 %v652_v30, %v105_v5  ;;  %v187_v19 = vshll.u32 %v554_v32, %v184_v3 }
  0x9c   :  { %v665_v8 = vmul.u32.u64.low %v652_v30, %v113_v7  ;;  %v666_v9 = vmul.u32.u64.high %v652_v30, %v113_v7, %v665_v8  ;;  %v669_v10 = vmul.u32.u64.low %v652_v30, %v109_v6  ;;  %v670_v11 = vmul.u32.u64.high %v652_v30, %v109_v6, %v669_v10 }
  0x9d   :  { %v190_v20 = vshll.u32 %v555_v36, %v184_v3  ;;  %v193_v21 = vshll.u32 %v556_v38, %v184_v3  ;;  %v188_v22 = vshrl.u32 %v555_v36, %v185_v15  ;;  %v191_v23 = vshrl.u32 %v556_v38, %v185_v15 }
  0x9e   :  { %v194_v24 = vshrl.u32 %v557_v40, %v185_v15  ;;  %v196_v26 = vshll.u32 %v557_v40, %v184_v3  ;;  %vm123_vm7 = vc.u32 %v666_v9, %v669_v10  ;;  %v124_v27 = vadd.s32 1, %v670_v11 }
  0x9f   :  { %v197_v28 = vshrl.u32 %v558_v42, %v185_v15  ;;  %v199_v29 = vshll.u32 %v558_v42, %v184_v3  ;;  %v189_v31 = vor.u32 %v188_v22, %v187_v19  ;;  %v192_v33 = vor.u32 %v191_v23, %v190_v20 }
  0xa0   :  { %v195_v34 = vor.u32 %v194_v24, %v193_v21  ;;  %v200_v35 = vshrl.u32 %v559_v49, %v185_v15  ;;  %v125_v30 = vsel %vm123_vm7, %v124_v27, %v670_v11  ;;  %vm202_vm8 = vcmp.lt.s32.totalorder %v183_v13, 1 }
  0xa1   :  { %v198_v37 = vor.u32 %v197_v28, %v196_v26  ;;  %vm205_vm9 = vcmp.lt.s32.totalorder %v183_v13, 4  ;;  %v126_v36 = vadd.s32 %v125_v30, %v121_v17  ;;  %vm204_vm10 = vcmp.lt.s32.totalorder %v183_v13, 3 }
  0xa2   :  { %v201_v38 = vor.u32 %v200_v35, %v199_v29  ;;  %v207_v39 = vsel %vm205_vm9, %v195_v34, 2102212464  ;;  %v186_v40 = vshrl.u32 %v554_v32, %v185_v15  ;;  %v210_v41 = vsel %vm202_vm8, %v189_v31, %v192_v33 }
  0xa3   :  { %v211_v43 = vsel %vm205_vm9, %v198_v37, 920167782  ;;  %v214_v44 = vsel %vm202_vm8, %v192_v33, %v195_v34  ;;  %v127_v45 = vadd.s32 536870912, %v126_v36  ;;  %vm203_vm11 = vcmp.lt.s32.totalorder %v183_v13, 2 }
  0xa4   :  { %v212_v42 = vsel %vm204_vm10, %v195_v34, %v211_v43  ;;  %v215_v46 = vsel %vm205_vm9, %v201_v38, 1326507024  ;;  %v206_v47 = vsel %vm202_vm8, %v186_v40, %v189_v31  ;;  %v208_v48 = vsel %vm204_vm10, %v192_v33, %v207_v39 }
  0xa5   :  { %v213_v49 = vsel %vm203_vm11, %v210_v41, %v212_v42  ;;  %v216_v50 = vsel %vm204_vm10, %v198_v37, %v215_v46  ;;  %v680_v51 = vshrl.u32 %v127_v45, 30  ;;  %v209_v57 = vsel %vm203_vm11, %v206_v47, %v208_v48 }
  0xa6   :  { %v217_v52 = vsel %vm203_vm11, %v214_v44, %v216_v50  ;;  %v682_v53 = vmul.u32.u64.low %v218_v16, %v213_v49  ;;  %v683_v54 = vmul.u32.u64.high %v218_v16, %v213_v49, %v682_v53  ;;  %v225_v60 = vmul.u32 %v218_v16, %v209_v57 }
  0xa7   :  { %v685_v55 = vmul.u32.u64.low %v218_v16, %v217_v52  ;;  %v686_v56 = vmul.u32.u64.high %v218_v16, %v217_v52, %v685_v55  ;;  %v129_v32 = vshll.u32 %v680_v51, 30  ;;  %v122_v11 = vadd.s32 %v669_v10, %v666_v9 }
  0xa8   :  { %v228_v59 = vadd.s32 1, %v683_v54  ;;  %v152_v45 = vsub.s32 4, %v680_v51  ;;  %vm171_vm2 = vcmp.le.f32.partialorder %v170_v25, 0.7853982  ;;  %vm158_vm9 = vweird.f32 %v642_v12 }
  0xa9   :  { %v130_v58 = vsub.s32 %v126_v36, %v129_v32  ;;  %vm227_vm12 = vc.u32 %v686_v56, %v682_v53  ;;  %v226_v34 = vadd.s32 %v682_v53, %v686_v56  ;;  %vm262_vm10 = vweird.f32 %v646_v18 }
  0xaa   :  { %v229_v62 = vsel %vm227_vm12, %v228_v59, %v683_v54  ;;  %v153_v14 = vsel %vm68_vm15, %v152_v45, %v680_v51  ;;  %vm310_vm11 = vcmask 261120  }
  0xab   :  { %v132_v61 = vsub.s32 0, %v130_v58  ;;  %v230_v63 = vadd.s32 %v229_v62, %v225_v60  ;;  %v155_v53 = vsel %vm700_vm0, 0, %v153_v14 }
  0xac   :  { %v159_v55 = vadd.s32 3, %v155_v53 }
  0xad   :  { %v455_v0 = vmin.u32 %v132_v61, %v130_v58  ;;  %v231_v1 = vadd.s32 536870912, %v230_v63 }
  0xaf   :  { %v134_v2 = vclz %v455_v0  ;;  %v232_v3 = vshrl.u32 %v231_v1, 30 }
  0xb1   :  { %v456_v5 = vadd.s32 4294967294, %v134_v2  ;;  %v233_v6 = vshll.u32 %v232_v3, 30  ;;  %v256_v48 = vsub.s32 4, %v232_v3 }
  0xb3   :  { %vm457_vm13 = vcmp.lt.s32.totalorder %v456_v5, 0  ;;  %v234_v8 = vsub.s32 %v230_v63, %v233_v6  ;;  %v257_v52 = vsel %vm172_vm1, %v256_v48, %v232_v3 }
  0xb4   :  { %v137_v7 = vsel %vm457_vm13, 0, %v456_v5  ;;  %v259_v56 = vsel %vm171_vm2, 0, %v257_v52 }
  0xb5   :  { %v138_v13 = vsub.s32 32, %v137_v7  ;;  %v142_v15 = vsub.s32 4294967266, %v137_v7  ;;  %v236_v16 = vsub.s32 0, %v234_v8  ;;  %v139_v17 = vshll.u32 %v130_v58, %v137_v7 }
  0xb6   :  { %v263_v51 = vadd.s32 3, %v259_v56  ;;  %v160_v58 = vand.u32 3, %v159_v55 }
  0xb7   :  { %v140_v19 = vshrl.u32 %v122_v11, %v138_v13  ;;  %v143_v20 = vadd.s32 127, %v142_v15  ;;  %v459_v21 = vmin.u32 %v236_v16, %v234_v8  ;;  %v517_v15 = vld [vmem:[%s758_s7] sm:$0xff]  }
  0xb8   :  { %v264_v61 = vand.u32 3, %v263_v51  ;;  %vm162_vm3 = vcmp.eq.s32.totalorder %v160_v58, 0  ;;  %vm165_vm4 = vcmp.eq.s32.totalorder %v160_v58, 2  ;;  %vm161_vm5 = vcmp.lt.s32.totalorder %v160_v58, 2  ;;  %486 = vmatpush3.bf16.msra.mxu1 %v517_v15  ;;  %v462_v16 = vld [vmem:[%s756_s5] ss:$0 sm:$0xff] }
  0xb9   :  { %v141_v22 = vor.u32 %v140_v19, %v139_v17  ;;  %v144_v23 = vshll.u32 %v143_v20, 23  ;;  %v238_v24 = vclz %v459_v21  ;;  %487 = vmatprep.subr.bf16.mxu1 %v552_v4  ;;  %v466_v21 = vld [vmem:[%s757_s6] ss:$0 sm:$0xff]  ;;  %s441_s6 = sshll.u32 %s560_s28, 4  ;;  %s442_s6 = int_to_ptr.vmem [resolvable:$true] %s441_s6 }
  0xba   :  { %vm269_vm6 = vcmp.eq.s32.totalorder %v264_v61, 2  ;;  %vm266_vm7 = vcmp.eq.s32.totalorder %v264_v61, 0  ;;  %vm265_vm8 = vcmp.lt.s32.totalorder %v264_v61, 2  ;;  %s527_s29 = scalar_lea.vmem %s442_s6, 256  ;;  %p532_p1 = scmp.lt.s32.totalorder %s442_s6, %s442_s6 }
  0xbb   :  { %v145_v26 = vor.u32 4788187, %v144_v23  ;;  %v460_v27 = vadd.s32 4294967294, %v238_v24  ;;  %v148_v29 = vcvt.s32.f32 %v141_v22  ;;  %p528_p0 = scmp.ne.s32.totalorder %s442_s6, %s527_s29  ;;  %p533_p2 = scmp.lt.s32.totalorder %s527_s29, %s527_s29 }
  0xbd   :  { %v146_v28 = vand.u32 2147483647, %v145_v26  ;;  %vm461_vm14 = vcmp.lt.s32.totalorder %v460_v27, 0  ;;  %p534_p3 = por %p533_p2, %p532_p1 }
  0xbe   :  { %v241_v33 = vsel %vm461_vm14, 0, %v460_v27 }
  0xbf   :  { %v149_v31 = vmul.f32 %v148_v29, %v146_v28  ;;  %v242_v9 = vsub.s32 32, %v241_v33  ;;  %v246_v10 = vsub.s32 4294967266, %v241_v33  ;;  %v243_v30 = vshll.u32 %v234_v8, %v241_v33  ;;  %p535_p4 = pnand %p534_p3, %p528_p0 }
  0xc1   :  { %v150_v35 = vxor.u32 2147483648, %v149_v31  ;;  %v244_v37 = vshrl.u32 %v226_v34, %v242_v9  ;;  %v247_v36 = vadd.s32 127, %v246_v10  ;;  %v467_v9 = vld [vmem:[%s759_s8] ss:$0 sm:$0xff] }
  0xc3   :  { %v151_v38 = vsel %vm68_vm15, %v150_v35, %v149_v31  ;;  %v245_v40 = vor.u32 %v244_v37, %v243_v30  ;;  %v248_v41 = vshll.u32 %v247_v36, 23 }
  0xc4   :  { %v154_v43 = vsel %vm700_vm0, %v642_v12, %v151_v38  ;;  %v518_v12 = vld [vmem:[%s758_s7 + $0x8] sm:$0xff]  }
  0xc5   :  { %v249_v44 = vor.u32 4788187, %v248_v41  ;;  %519 = vcosq.f32 %v154_v43  ;;  %v252_v46 = vcvt.s32.f32 %v245_v40  ;;  %488 = vmatpush3.bf16.msra.mxu1 %v518_v12 }
  0xc6   :  { %521 = vsinq.f32 %v154_v43 }
  0xc7   :  { %v250_v42 = vand.u32 2147483647, %v249_v44 }
  0xc9   :  { %v253_v47 = vmul.f32 %v252_v46, %v250_v42 }
  0xcb   :  { %v254_v49 = vxor.u32 2147483648, %v253_v47 }
  0xcd   :  { %v255_v50 = vsel %vm172_vm1, %v254_v49, %v253_v47 }
  0xce   :  { %v258_v54 = vsel %vm171_vm2, %v646_v18, %v255_v50  ;;  %v283_v18 = vpop.permute.xlu1 %282 }
  0xcf   :  { %523 = vcosq.f32 %v258_v54  ;;  %v520_v32 = vpop.eup %519  ;;  %v296_v19 = vmul.f32 %v462_v16, %v283_v18 }
  0xd0   :  { %525 = vsinq.f32 %v258_v54  ;;  %v522_v57 = vpop.eup %521  ;;  %v166_v60 = vxor.u32 2147483648, %v520_v32 }
  0xd1   :  { %v163_v59 = vxor.u32 2147483648, %v522_v57 }
  0xd2   :  { %v167_v63 = vsel %vm165_vm4, %v166_v60, %v522_v57  ;;  %v288_v17 = vpop.permute.xlu1 %287 }
  0xd3   :  { %v164_v62 = vsel %vm162_vm3, %v520_v32, %v163_v59  ;;  %v297_v22 = vmul.f32 %v462_v16, %v288_v17 }
  0xd4   :  { %v168_v3 = vsel %vm161_vm5, %v164_v62, %v167_v63 }
  0xd5   :  { %v169_v8 = vsel %vm158_vm9, nan, %v168_v3 }
  0xd9   :  { %v524_v25 = vpop.eup %523 }
  0xda   :  { %v526_v0 = vpop.eup %525  ;;  %v270_v1 = vxor.u32 2147483648, %v524_v25 }
  0xdb   :  { %v267_v2 = vxor.u32 2147483648, %v526_v0 }
  0xdc   :  { %v271_v5 = vsel %vm269_vm6, %v270_v1, %v526_v0 }
  0xdd   :  { %v268_v6 = vsel %vm266_vm7, %v524_v25, %v267_v2 }
  0xde   :  { %v272_v7 = vsel %vm265_vm8, %v268_v6, %v271_v5 }
  0xdf   :  { %v273_v11 = vsel %vm262_vm10, nan, %v272_v7 }
  0xe0   :  { %v274_v13 = vpack.c.bf16 %v273_v11, %v169_v8 }
  0xe2   :  { %482 = vmatmul.mubr.msk.bf16.vlgmr.msra.gmra.mrb[0].mxu0 %vm310_vm11, %v274_v13 }
 0x1b5   :  { %v348_v20 = vpop.f32.mrb[0].mxu0 }
 0x1b6   :  { %v349_v23 = vadd.f32 %v348_v20, %v296_v19  ;;  %v483_v4 = vpop.f32.mrb[1].mxu0 }
 0x1b7   :  { %v351_v24 = vpop.f32.mrb[2].mxu0 }
 0x1b8   :  { %v362_v26 = vadd.f32 %v466_v21, %v349_v23  ;;  %v352_v27 = vadd.f32 %v351_v24, %v297_v22  ;;  %v484_v28 = vpop.f32.mrb[3].mxu0 }
 0x1ba   :  { %v363_v29 = vadd.f32 %v466_v21, %v352_v27  ;;  %v364_v31 = vmax.f32 %v362_v26, 0.0 }
 0x1bc   :  { %v365_v33 = vmax.f32 %v363_v29, 0.0 }
 0x1be   :  { %v366_v34 = vpack.c.bf16 %v365_v33, %v364_v31 }
 0x1c0   :  { %490 = vmatmul.mubr.msk.bf16.vlgmr.msra.gmra.mrb[0].mxu1 %vm310_vm11, %v366_v34 }
 0x293   :  { %v427_v10 = vpop.f32.mrb[0].mxu1 }
 0x294   :  { %v428_v35 = vadd.f32 %v467_v9, %v427_v10  ;;  %v491_v30 = vpop.f32.mrb[1].mxu1 }
 0x295   :  { %v430_v37 = vpop.f32.mrb[2].mxu1 }
 0x296   :  { %434 = vst.msk [vmem:[#allocation2] sm:$0xff] %vm310_vm11, %v428_v35  ;;  %v431_v36 = vadd.f32 %v467_v9, %v430_v37  ;;  %v492_v38 = vpop.f32.mrb[3].mxu1 }
 0x298   :  { %435 = vst.msk [vmem:[#allocation2 + $0x8] sm:$0xff] %vm310_vm11, %v431_v36 }
 0x299   :  { %538 = shalt.err (!%p535_p4)
}
 0x29a   :  { %s539_s10 = scalar_lea.hbm %s760_s9, 256 }
 0x29b   :  { %p540_p5 = scmp.ne.s32.totalorder %s760_s9, %s539_s10  ;;  %p543_p6 = scmp.lt.u32.totalorder %s539_s10, %s760_s9 }
 0x29d   :  { %p545_p7 = pnand %p543_p6, %p540_p5 }
 0x29f   :  { %548 = shalt.err (!%p545_p7)
}
 0x2a0   :  { %s561_s15 = smov 128   ;;  %s562_s16 = smov 8  }
 0x2a1   :  { %447 = dma.vmem_to_hbm [thread:$0]  %s442_s6, 256, %s760_s9, [#allocation3], %s561_s15, %s561_s15, %s562_s16  }
 0x2a2   :  { %549 = dma.done.wait [#allocation3], 256  }
 0x2a3   :  { %550 = vsyncadd [#allocation3], 4294967040 }
 0x2a4   :  { %451 = vsyncpa [#allocation3], 1 }

</bundles_post_ra>
